<compile_context>
chip_gen: v5e
topology: v5e:2x2
jax: 0.10.0
libtpu: 0.0.40
codegen_flags: <defaults>
</compile_context>

<pallas_src>
import jax
import jax.numpy as jnp
import numpy as np
from jax.experimental import pallas as pl
from jax.experimental.pallas import tpu as pltpu

_BN_EPS = 1e-5
_LANES = 128
_TARGET_M_ROWS = 512           # target conv rows (tb * L) per tile
_VMEM_LIMIT = 32 * 1024 * 1024  # explicit scoped-VMEM cap (safe on v5e/v6e/v7x)


def _round_up(n, m):
    return ((n + m - 1) // m) * m


def _conv_stats_kernel(x_ref, w_ref, stat_ref):
    """Pass 1: per-tile conv + per-channel sum / sum-of-squares accumulation.

    x_ref:    (TB, L+2, Cin) bf16  input tile, zero halo of 1 on each side of L
    w_ref:    (3, Cin, Cp)   bf16  conv weight, Cout zero-padded to Cp lanes
    stat_ref: (2, Cp)        f32   [sum(z); sum(z*z)] -- resident across the grid
    """
    TB, Lp2, Cin = x_ref.shape
    L = Lp2 - 2
    Cp = stat_ref.shape[-1]

    @pl.when(pl.program_id(0) == 0)
    def _():
        stat_ref[...] = jnp.zeros_like(stat_ref)

    # Conv as 3 accumulated MXU matmuls on the shifted windows (no im2col scratch).
    z = jnp.zeros((TB * L, Cp), jnp.float32)
    for k in range(3):
        slab = x_ref[:, k:k + L, :].reshape(TB * L, Cin)
        z = z + jnp.dot(slab, w_ref[k], preferred_element_type=jnp.float32)

    stat_ref[0:1, :] += jnp.sum(z, axis=0, keepdims=True)
    stat_ref[1:2, :] += jnp.sum(z * z, axis=0, keepdims=True)


def _conv_apply_kernel(x_ref, w_ref, scale_ref, shift_ref, o_ref):
    """Pass 2: recompute conv tile, apply folded BN affine + ELU + AvgPool1d(2).

    x_ref:     (TB, L+2, Cin) bf16
    w_ref:     (3, Cin, Cp)   bf16
    scale_ref: (1, Cp)        f32   gamma * rsqrt(var + eps)  (0 in padded lanes)
    shift_ref: (1, Cp)        f32   beta - mean * scale       (0 in padded lanes)
    o_ref:     (TB, Lo, Cp)   f32   pooled output, lane-dense
    """
    TB, Lp2, Cin = x_ref.shape
    L = Lp2 - 2
    Lo = L // 2
    Cp = o_ref.shape[-1]

    z = jnp.zeros((TB * L, Cp), jnp.float32)
    for k in range(3):
        slab = x_ref[:, k:k + L, :].reshape(TB * L, Cin)
        z = z + jnp.dot(slab, w_ref[k], preferred_element_type=jnp.float32)

    y = z * scale_ref[...] + shift_ref[...]
    # ELU (alpha=1); exp(y)-1 keeps the guaranteed EUP path (delta vs expm1 << tol).
    y = jnp.where(y > 0, y, jnp.exp(y) - 1.0)

    # AvgPool1d(kernel=2, stride=2): adjacent L rows pair up within a batch element.
    pooled = 0.5 * (y[0::2, :] + y[1::2, :])              # (TB*Lo, Cp)
    o_ref[...] = pooled.reshape(TB, Lo, Cp).astype(o_ref.dtype)


def prepare_block_params(w_oik, gamma, beta):
    """One-time parameter prep (hoisted out of the forward pass).

    w_oik: (Cout, Cin, 3) PyTorch Conv1d weight.  Conv bias is not needed under
    training-mode BN.  Returns (3, Cin, Cp) bf16 weights and (Cp,) BN params,
    with Cout zero-padded to a multiple of 128 lanes.
    """
    cout, cin, k = w_oik.shape
    cp = _round_up(cout, _LANES)
    w_kic = jnp.transpose(w_oik, (2, 1, 0)).astype(jnp.bfloat16)      # (3, Cin, Cout)
    w_pad = jnp.zeros((k, cin, cp), jnp.bfloat16).at[:, :, :cout].set(w_kic)
    g_pad = jnp.zeros((cp,), jnp.float32).at[:cout].set(gamma.astype(jnp.float32))
    b_pad = jnp.zeros((cp,), jnp.float32).at[:cout].set(beta.astype(jnp.float32))
    return {"w": w_pad, "gamma": g_pad, "beta": b_pad, "cout": cout}


def cnn_block(x_nlc, prep, *, batch_tile=None):
    """x_nlc: (B, L, Cin) NLC.  Returns (B, L//2, Cout) NLC, f32.

    Chain blocks in NLC directly to avoid NCL<->NLC transposes between blocks.
    """
    B, L, Cin = x_nlc.shape
    assert L % 2 == 0, "AvgPool1d(2) expects even L"
    Lo = L // 2
    w = prep["w"]
    K, cin_w, Cp = w.shape
    assert cin_w == Cin

    if batch_tile is None:
        batch_tile = max(1, min(B, _TARGET_M_ROWS // max(L, 1)))
    tb = int(batch_tile)
    Bp = _round_up(B, tb)
    n_tiles = Bp // tb

    # bf16 cast + 1-element L halo + batch zero-pad, all one fused wrapper op.
    # Zero batch rows contribute nothing to sum/sumsq, so stats stay exact as
    # long as we divide by the true B*L below.
    x_pad = jnp.pad(x_nlc.astype(jnp.bfloat16), ((0, Bp - B), (1, 1), (0, 0)))

    # ---- Pass 1: per-channel sum / sum-of-squares across all tiles ----
    stats = pl.pallas_call(
        _conv_stats_kernel,
        out_shape=jax.ShapeDtypeStruct((2, Cp), jnp.float32),
        grid=(n_tiles,),
        in_specs=[
            pl.BlockSpec((tb, L + 2, Cin), lambda i: (i, 0, 0)),
            pl.BlockSpec((K, Cin, Cp), lambda i: (0, 0, 0)),
        ],
        out_specs=pl.BlockSpec((2, Cp), lambda i: (0, 0)),
        compiler_params=pltpu.CompilerParams(
            dimension_semantics=("arbitrary",),
            vmem_limit_bytes=_VMEM_LIMIT),
    )(x_pad, w)

    # Fold training-mode BN (biased batch stats over the true B*L) into one affine.
    n = jnp.float32(B * L)
    mean = stats[0] / n
    var = stats[1] / n - mean * mean
    scale = prep["gamma"] * jax.lax.rsqrt(var + _BN_EPS)   # (Cp,)
    shift = prep["beta"] - mean * scale                    # (Cp,)
    scale = scale.reshape(1, Cp)
    shift = shift.reshape(1, Cp)

    # ---- Pass 2: conv + affine + ELU + pool, batch tiles independent ----
    out = pl.pallas_call(
        _conv_apply_kernel,
        out_shape=jax.ShapeDtypeStruct((Bp, Lo, Cp), jnp.float32),
        grid=(n_tiles,),
        in_specs=[
            pl.BlockSpec((tb, L + 2, Cin), lambda i: (i, 0, 0)),
            pl.BlockSpec((K, Cin, Cp), lambda i: (0, 0, 0)),
            pl.BlockSpec((1, Cp), lambda i: (0, 0)),
            pl.BlockSpec((1, Cp), lambda i: (0, 0)),
        ],
        out_specs=pl.BlockSpec((tb, Lo, Cp), lambda i: (i, 0, 0)),
        compiler_params=pltpu.CompilerParams(
            dimension_semantics=("parallel",),
            vmem_limit_bytes=_VMEM_LIMIT),
    )(x_pad, w, scale, shift)

    return out[:B, :, :prep["cout"]]


def cnn_block_forward(x_ncl, prep, *, batch_tile=None):
    """CNNBlock.forward: (B, Cin, L) NCL -> (B, Cout, L//2) NCL."""
    x = jnp.transpose(x_ncl, (0, 2, 1))                   # NCL -> NLC
    y = cnn_block(x, prep, batch_tile=batch_tile)
    return jnp.transpose(y, (0, 2, 1))                    # NLC -> NCL


def reference_forward(x_ncl, w_oik, bias, gamma, beta):
    """Pure-JAX reference mirroring the PyTorch CNNBlock forward (training-mode BN)."""
    y = jax.lax.conv_general_dilated(
        x_ncl.astype(jnp.float32), w_oik, window_strides=(1,), padding=[(1, 1)],
        dimension_numbers=("NCH", "OIH", "NCH"))
    y = y + bias[None, :, None]
    mean = y.mean(axis=(0, 2), keepdims=True)
    var = ((y - mean) ** 2).mean(axis=(0, 2), keepdims=True)
    y = (y - mean) / jnp.sqrt(var + _BN_EPS)
    y = y * gamma[None, :, None] + beta[None, :, None]
    y = jnp.where(y > 0, y, jnp.expm1(y))                 # ELU
    B, C, Lc = y.shape
    Lo = Lc // 2
    return y[..., :2 * Lo].reshape(B, C, Lo, 2).mean(-1)  # AvgPool1d(2)


if __name__ == "__main__":
    B, C_IN, C_OUT, L = 2, 4, 32, 16
    key = jax.random.PRNGKey(0)
    kx, kw, kb, kg, kbe = jax.random.split(key, 5)

    x = jax.random.normal(kx, (B, C_IN, L), jnp.float32)
    bound = 1.0 / np.sqrt(C_IN * 3)
    w = jax.random.uniform(kw, (C_OUT, C_IN, 3), jnp.float32, -bound, bound)
    b = jax.random.uniform(kb, (C_OUT,), jnp.float32, -bound, bound)
    gamma = 1.0 + 0.1 * jax.random.normal(kg, (C_OUT,), jnp.float32)
    beta = 0.1 * jax.random.normal(kbe, (C_OUT,), jnp.float32)

    prep = prepare_block_params(w, gamma, beta)
    ref = reference_forward(x, w, b, gamma, beta)

    # Multi-tile grid (batch_tile=1 -> 2 grid steps: exercises cross-tile stat
    # accumulation + pipelining) and the default tile-size heuristic.
    out_tiled = jax.block_until_ready(cnn_block_forward(x, prep, batch_tile=1))
    out_default = jax.block_until_ready(cnn_block_forward(x, prep))

    assert out_tiled.shape == (B, C_OUT, L // 2), out_tiled.shape
    np.testing.assert_allclose(np.asarray(out_tiled), np.asarray(ref),
                               rtol=2e-2, atol=2e-2)
    np.testing.assert_allclose(np.asarray(out_default), np.asarray(ref),
                               rtol=2e-2, atol=2e-2)
    print("KERNEL_OK")
</pallas_src>

<mosaic_0001>
module attributes {stable_mosaic.version = 11 : i64} {
  func.func @_conv_stats_kernel(%arg0: i32, %arg1: memref<1x18x4xbf16, #tpu.memory_space<vmem>>, %arg2: memref<3x4x128xbf16, #tpu.memory_space<vmem>>, %arg3: memref<2x128xf32, #tpu.memory_space<vmem>>) attributes {dimension_semantics = [#tpu.dimension_semantics<arbitrary>], iteration_bounds = array<i64: 2>, scalar_prefetch = 0 : i64, scratch_operands = 0 : i64, tpu.core_type = #tpu.core_type<tc>, window_params = [{transform_indices = @transform_0, window_bounds = array<i64: 1, 18, 4>}, {pipeline_mode = #tpu.pipeline_mode<synchronous>, transform_indices = @transform_1, window_bounds = array<i64: 3, 4, 128>}, {pipeline_mode = #tpu.pipeline_mode<synchronous>, transform_indices = @transform_2, window_bounds = array<i64: 2, 128>}]} {
    %c0_i32 = arith.constant 0 : i32
    %0 = arith.cmpi eq, %arg0, %c0_i32 : i32
    %1 = arith.extui %0 : i1 to i32
    %c0_i32_0 = arith.constant 0 : i32
    %2 = arith.cmpi ne, %1, %c0_i32_0 : i32
    scf.if %2 {
      %cst_29 = arith.constant 0.000000e+00 : f32
      %33 = vector.broadcast %cst_29 : f32 to vector<2x128xf32>
      %c0_30 = arith.constant 0 : index
      %c0_31 = arith.constant 0 : index
      %34 = vector.load %arg3[%c0_30, %c0_31] : memref<2x128xf32, #tpu.memory_space<vmem>>, vector<2x128xf32>
      tpu.vector_store %arg3[%c0_30, %c0_31], %33 {strides = array<i32>} : memref<2x128xf32, #tpu.memory_space<vmem>>, vector<2x128xf32>,
    } else {
    }
    %cst = arith.constant 0.000000e+00 : f32
    %3 = vector.broadcast %cst : f32 to vector<16x128xf32>
    %c0 = arith.constant 0 : index
    %c0_1 = arith.constant 0 : index
    %c0_2 = arith.constant 0 : index
    %4 = vector.load %arg1[%c0, %c0_1, %c0_2] : memref<1x18x4xbf16, #tpu.memory_space<vmem>>, vector<1x16x4xbf16>
    %5 = vector.shape_cast %4 : vector<1x16x4xbf16> to vector<16x4xbf16>
    %c0_3 = arith.constant 0 : index
    %c0_4 = arith.constant 0 : index
    %c0_5 = arith.constant 0 : index
    %6 = vector.load %arg2[%c0_3, %c0_4, %c0_5] : memref<3x4x128xbf16, #tpu.memory_space<vmem>>, vector<1x4x128xbf16>
    %7 = vector.shape_cast %6 : vector<1x4x128xbf16> to vector<4x128xbf16>
    %cst_6 = arith.constant dense<0.000000e+00> : vector<16x128xf32>
    %8 = tpu.matmul %5, %7, %cst_6 {dimension_numbers = #tpu.dot_dimension_numbers<[1], [0], [0], [1], [0, 0, 1, 1], [], []>} : vector<16x4xbf16>, vector<4x128xbf16>, vector<16x128xf32> -> vector<16x128xf32>
    %9 = arith.addf %3, %8 : vector<16x128xf32>
    %c0_7 = arith.constant 0 : index
    %c1 = arith.constant 1 : index
    %c0_8 = arith.constant 0 : index
    %10 = vector.load %arg1[%c0_7, %c1, %c0_8] : memref<1x18x4xbf16, #tpu.memory_space<vmem>>, vector<1x16x4xbf16>
    %11 = vector.shape_cast %10 : vector<1x16x4xbf16> to vector<16x4xbf16>
    %c1_9 = arith.constant 1 : index
    %c0_10 = arith.constant 0 : index
    %c0_11 = arith.constant 0 : index
    %12 = vector.load %arg2[%c1_9, %c0_10, %c0_11] : memref<3x4x128xbf16, #tpu.memory_space<vmem>>, vector<1x4x128xbf16>
    %13 = vector.shape_cast %12 : vector<1x4x128xbf16> to vector<4x128xbf16>
    %cst_12 = arith.constant dense<0.000000e+00> : vector<16x128xf32>
    %14 = tpu.matmul %11, %13, %cst_12 {dimension_numbers = #tpu.dot_dimension_numbers<[1], [0], [0], [1], [0, 0, 1, 1], [], []>} : vector<16x4xbf16>, vector<4x128xbf16>, vector<16x128xf32> -> vector<16x128xf32>
    %15 = arith.addf %9, %14 : vector<16x128xf32>
    %c0_13 = arith.constant 0 : index
    %c2 = arith.constant 2 : index
    %c0_14 = arith.constant 0 : index
    %16 = vector.load %arg1[%c0_13, %c2, %c0_14] : memref<1x18x4xbf16, #tpu.memory_space<vmem>>, vector<1x16x4xbf16>
    %17 = vector.shape_cast %16 : vector<1x16x4xbf16> to vector<16x4xbf16>
    %c2_15 = arith.constant 2 : index
    %c0_16 = arith.constant 0 : index
    %c0_17 = arith.constant 0 : index
    %18 = vector.load %arg2[%c2_15, %c0_16, %c0_17] : memref<3x4x128xbf16, #tpu.memory_space<vmem>>, vector<1x4x128xbf16>
    %19 = vector.shape_cast %18 : vector<1x4x128xbf16> to vector<4x128xbf16>
    %cst_18 = arith.constant dense<0.000000e+00> : vector<16x128xf32>
    %20 = tpu.matmul %17, %19, %cst_18 {dimension_numbers = #tpu.dot_dimension_numbers<[1], [0], [0], [1], [0, 0, 1, 1], [], []>} : vector<16x4xbf16>, vector<4x128xbf16>, vector<16x128xf32> -> vector<16x128xf32>
    %21 = arith.addf %15, %20 : vector<16x128xf32>
    %c0_19 = arith.constant 0 : index
    %c0_20 = arith.constant 0 : index
    %22 = vector.load %arg3[%c0_19, %c0_20] : memref<2x128xf32, #tpu.memory_space<vmem>>, vector<1x128xf32>
    %cst_21 = arith.constant dense<0.000000e+00> : vector<128xf32>
    %23 = vector.multi_reduction <add>, %21, %cst_21 [0] : vector<16x128xf32> to vector<128xf32>
    %24 = vector.shape_cast %23 : vector<128xf32> to vector<1x128xf32>
    %25 = arith.addf %22, %24 : vector<1x128xf32>
    %c0_22 = arith.constant 0 : index
    %c0_23 = arith.constant 0 : index
    %26 = vector.load %arg3[%c0_22, %c0_23] : memref<2x128xf32, #tpu.memory_space<vmem>>, vector<1x128xf32>
    tpu.vector_store %arg3[%c0_22, %c0_23], %25 {strides = array<i32>} : memref<2x128xf32, #tpu.memory_space<vmem>>, vector<1x128xf32>,
    %c1_24 = arith.constant 1 : index
    %c0_25 = arith.constant 0 : index
    %27 = vector.load %arg3[%c1_24, %c0_25] : memref<2x128xf32, #tpu.memory_space<vmem>>, vector<1x128xf32>
    %28 = arith.mulf %21, %21 : vector<16x128xf32>
    %cst_26 = arith.constant dense<0.000000e+00> : vector<128xf32>
    %29 = vector.multi_reduction <add>, %28, %cst_26 [0] : vector<16x128xf32> to vector<128xf32>
    %30 = vector.shape_cast %29 : vector<128xf32> to vector<1x128xf32>
    %31 = arith.addf %27, %30 : vector<1x128xf32>
    %c1_27 = arith.constant 1 : index
    %c0_28 = arith.constant 0 : index
    %32 = vector.load %arg3[%c1_27, %c0_28] : memref<2x128xf32, #tpu.memory_space<vmem>>, vector<1x128xf32>
    tpu.vector_store %arg3[%c1_27, %c0_28], %31 {strides = array<i32>} : memref<2x128xf32, #tpu.memory_space<vmem>>, vector<1x128xf32>,
    return
  }
  func.func @transform_0(%arg0: i32) -> (i32, i32, i32) {
    %c0_i32 = arith.constant 0 : i32
    %c0_i32_0 = arith.constant 0 : i32
    %c0_i32_1 = arith.constant 0 : i32
    return %arg0, %c0_i32, %c0_i32_0 : i32, i32, i32
  }
  func.func @transform_1(%arg0: i32) -> (i32, i32, i32) {
    %c0_i32 = arith.constant 0 : i32
    %c0_i32_0 = arith.constant 0 : i32
    %c0_i32_1 = arith.constant 0 : i32
    %c0_i32_2 = arith.constant 0 : i32
    return %c0_i32, %c0_i32_0, %c0_i32_1 : i32, i32, i32
  }
  func.func @transform_2(%arg0: i32) -> (i32, i32) {
    %c0_i32 = arith.constant 0 : i32
    %c0_i32_0 = arith.constant 0 : i32
    %c0_i32_1 = arith.constant 0 : i32
    return %c0_i32, %c0_i32_0 : i32, i32
  }
}

</mosaic_0001>

<bundles_post_ra>
// kernel: tpu_custom_call.1
= control target key start
LH: loop header
LB: loop body
LE: loop exit
PB: predicated region body
PF: predicated region fallthrough
CT: control target
= control target key end

     0   :  { %7 = vsyncpa [#allocation3], 0  ;;  %s402_s9 = smov 0   ;;  %s437_s0 = inlined_call_operand.vmem [shape: bf16[2,18,4], index: 0, kind: input, shape index: {}]   ;;  %s438_s1 = inlined_call_operand.vmem [shape: bf16[3,4,128], index: 1, kind: input, shape index: {}]   ;;  %s439_s2 = inlined_call_operand.hbm [shape: f32[2,128], index: 2, kind: output, shape index: {}]  }
   0x1 LB: > { %s408_s10 = sadd.s32 4294967295, %s383_s9   ;;  %p309_p0 = scmp.ge.s32.totalorder %s383_s9, 1  ;;  %s383_s9 = sphi %s402_s9, %s13_s9  }
   0x2   : > { %p108_p1 = scmp.lt.s32.totalorder %s383_s9, 3 }
   0x4   : > { %p109_p2 = pnand %p309_p0, %p108_p1 }
   0x5   : > { %p125_p3 = scmp.lt.s32.totalorder (!%p109_p2), %s408_s10, 1  ;;  %p311_p4 = scmp.ne.s32.totalorder (!%p109_p2), %s408_s10, 0 }
   0x6   : > { %112 = sbr.rel (%p109_p2) target bundleno = 192 (0xc0), region = 28 }
   0xb   : > { %s126_s11 = scalar_select %p125_p3, %s408_s10, 1 }
   0xc   : > { %134 = sbr.rel (%p311_p4) target bundleno = 19 (0x13), region = 32 }
   0xd   : > { %s328_s12 = smul.u32 12, %s126_s11 }
   0xf   : > { %s129_s15 = scalar_lea.vmem %s437_s0, %s328_s12 }
  0x11   : > { %v385_v0 = vmov 0.0  }
  0x12   : > { %135 = vst [vmem:[#allocation2] sm:$0x3] %v385_v0 }
  0x13 PF: > { %v138_v1 = vld [vmem:[%s438_s1] sm:$0x3]  ;;  %vm167_vm0 = vcmask 1041408   ;;  %v315_v5 = vld [vmem:[%s438_s1 + $0x4] sm:$0x3]  ;;  %vm163_vm1 = vcmask 31744  }
  0x14   : > { %v322_v2 = vld [vmem:[%s129_s15] sm:$0xff]   ;;  %v188_v3 = vsel %vm167_vm0, %v138_v1, 0  ;;  %v218_v6 = vsel %vm167_vm0, %v315_v5, 0  ;;  %v139_v10 = vld [vmem:[%s129_s15 + $0x8] sm:$0x1]  ;;  %vm210_vm2 = vcmask 1046528  }
  0x15   : > { %v154_v4 = vshll.u32 %v322_v2, 16  ;;  %197 = vmatpush.bf16.msra.mxu1 %v188_v3  ;;  %v312_v7 = vld [vmem:[%s438_s1 + $0x2] sm:$0x3]  ;;  %v325_v8 = vld [vmem:[%s129_s15] sm:$0xf0]  ;;  %227 = vmatpush.bf16.msra.mxu2 %v218_v6  ;;  %v152_v12 = vshrl.u32 %v322_v2, 16  ;;  %v147_v14 = vunpack.c.l.b16 %v139_v10 }
  0x16   : > { %v169_v9 = vsel %vm167_vm0, %v312_v7, 0  ;;  %v326_v11 = vld [vmem:[%s129_s15] sm:$0xe]  ;;  %vm150_vm3 = vsmask.f32 7424  ;;  %s386_s22 = smov [#allocation2]  }
  0x17   : > { %v156_v13 = vrot.slane %v154_v4, 1  ;;  %178 = vmatpush.bf16.msra.mxu0 %v169_v9  ;;  %v327_v15 = vor.u32 %v326_v11, %v325_v8  ;;  %v149_v16 = vpack.c.b16 %v147_v14, %v147_v14  ;;  %s264_s23 = sshll.u32 %s386_s22, 4  ;;  %s266_s26 = sshll.u32 %s439_s2, 4  ;;  %s265_s23 = int_to_ptr.vmem [resolvable:$true] %s264_s23  ;;  %s267_s26 = int_to_ptr.hbm [resolvable:$true] %s266_s26 }
  0x18   : > { %314 = vmatmul.msk.bf16.vlgmr.msra.gmra.mxu1 %vm163_vm1, %v322_v2  ;;  %p333_p5 = scmp.eq.s32.totalorder %s408_s10, 1 }
  0x19   : > { %v211_v17 = vrot.slane %v327_v15, 1  ;;  %v157_v18 = vor.u32 %v156_v13, %v152_v12  ;;  %v212_v19 = vrot.slane %v149_v16, 1  ;;  %v159_v20 = vshll.u32 %v149_v16, 16  ;;  %v236_v47 = vld [vmem:[#allocation2] sm:$0x1] }
  0x1a   : > { %v246_v50 = vld [vmem:[#allocation2 + $0x1] sm:$0x1] }
  0x1b   : > { %v213_v21 = vsel %vm210_vm2, %v211_v17, %v212_v19  ;;  %v161_v22 = vrot.slane %v159_v20, 1 }
  0x1c   : > { %316 = vmatmul.msk.bf16.vlgmr.msra.gmra.mxu2 %vm163_vm1, %v213_v21 }
  0x1d   : > { %v162_v23 = vsel %vm150_vm3, %v157_v18, %v161_v22 }
  0x1e   : > { %313 = vmatmul.msk.bf16.vlgmr.msra.gmra.mxu0 %vm163_vm1, %v162_v23 }
  0x95   : > { %v199_v24 = vpop.f32.mrf.mxu1 }
  0x9b   : > { %v180_v25 = vpop.f32.mrf.mxu0 }
  0x9c   : > { %v200_v27 = vadd.f32 %v199_v24, %v180_v25 }
  0x9d   : > { %v201_v29 = vpop.f32.mrf.mxu1 }
  0x9f   : > { %v229_v26 = vpop.f32.mrf.mxu2 }
  0xa0   : > { %v234_v30 = vadd.f32 %v229_v26, %v200_v27 }
  0xa2   : > { %v247_v34 = vmul.f32 %v234_v30, %v234_v30 }
  0xa3   : > { %v182_v28 = vpop.f32.mrf.mxu0 }
  0xa4   : > { %v202_v31 = vadd.f32 %v201_v29, %v182_v28 }
  0xa7   : > { %v231_v32 = vpop.f32.mrf.mxu2 }
  0xa8   : > { %v235_v33 = vadd.f32 %v231_v32, %v202_v31 }
  0xaa   : > { %v237_v35 = vadd.f32 %v235_v33, %v234_v30  ;;  %v248_v36 = vmul.f32 %v235_v33, %v235_v33 }
  0xac   : > { %v238_v37 = vrot.slane %v237_v35, 4  ;;  %v249_v38 = vadd.f32 %v248_v36, %v247_v34 }
  0xae   : > { %v239_v39 = vadd.f32 %v238_v37, %v237_v35  ;;  %v250_v40 = vrot.slane %v249_v38, 4 }
  0xb0   : > { %v240_v41 = vrot.slane %v239_v39, 2  ;;  %v251_v42 = vadd.f32 %v250_v40, %v249_v38 }
  0xb2   : > { %v241_v43 = vadd.f32 %v240_v41, %v239_v39  ;;  %v252_v44 = vrot.slane %v251_v42, 2 }
  0xb4   : > { %v242_v45 = vrot.slane %v241_v43, 1  ;;  %v253_v46 = vadd.f32 %v252_v44, %v251_v42 }
  0xb6   : > { %v243_v48 = vadd.f32 %v242_v45, %v241_v43  ;;  %v254_v49 = vrot.slane %v253_v46, 1 }
  0xb8   : > { %v244_v51 = vadd.f32 %v243_v48, %v236_v47  ;;  %v255_v52 = vadd.f32 %v254_v49, %v253_v46 }
  0xba   : > { %245 = vst [vmem:[#allocation2] sm:$0x1] %v244_v51  ;;  %v256_v53 = vadd.f32 %v255_v52, %v246_v50 }
  0xbc   : > { %257 = vst [vmem:[#allocation2 + $0x1] sm:$0x1] %v256_v53 }
  0xbd   : > { %330 = dma.vmem_to_hbm [thread:$0]  (%p333_p5), %s265_s23, 32, %s267_s26, [#allocation3]  }
  0xbe   : > { %378 = dma.done.wait (%p333_p5), [#allocation3], 32  }
  0xbf   : > { %380 = vsyncadd (%p333_p5), [#allocation3], 4294967264 }
  0xc0 PF: > { %s13_s9 = sadd.s32 1, %s383_s9  }
  0xc1   : > { %p10_p6 = scmp.ge.s32.totalorder %s13_s9, 4  }
  0xc3   :  { %12 = sbr.rel (!%p10_p6) target bundleno = 1 (0x1), region = 61 }
  0xc8   :  { %280 = vsyncpa [#allocation3], 1 }
  0xc9   :  { %282 = vsyncpa [#allocation3 + $0x1], 1 }

</bundles_post_ra>
